<compile_context>
chip_gen: v5e
topology: v5e:2x2
jax: 0.10.0
libtpu: 0.0.40
codegen_flags: <defaults>
</compile_context>

<pallas_src>
import jax
import jax.numpy as jnp
from jax.experimental import pallas as pl
from jax.experimental.pallas import tpu as pltpu


_FALLBACK_VMEM_CAP = 64 << 20  # v7x per-TC physical VMEM (smallest generation)


def _vmem_capacity_bytes():
    try:
        return int(pltpu.get_tpu_info().vmem_capacity_bytes)
    except Exception:
        return _FALLBACK_VMEM_CAP


def _round_up_8(n):
    return -(-int(n) // 8) * 8


def _round_down_8(n):
    return max(8, (int(n) // 8) * 8)


def _disc_kernel(x_ref, w1t_ref, w2_ref, o_ref):
    # x_ref  : (TB, 10F) VMEM  -- batch tile (f32 or bf16)
    # w1t_ref: (10F, F)  VMEM  -- pre-transposed first-layer weight, resident
    # w2_ref : (1, F)    VMEM  -- second-layer weight row, resident (f32)
    # o_ref  : (TB, 1)   VMEM
    h = jnp.dot(x_ref[...], w1t_ref[...], preferred_element_type=jnp.float32)
    # LeakyReLU, negative_slope = 0.1 (matches the PyTorch module).
    h = jnp.where(h > 0, h, 0.1 * h)
    # Second linear (F -> 1): VPU multiply + lane reduction (no N=1 matmul).
    out = jnp.sum(h * w2_ref[...], axis=-1, keepdims=True)  # (TB, 1) f32
    o_ref[...] = out.astype(o_ref.dtype)


def discriminator_single2(x, w1, w2, *, batch_tile=8192, compute_dtype=None):
    """Forward pass of DiscriminatorSingle2.

    x : (B, 10*F) float32
    w1: (F, 10*F)   PyTorch Linear weight layout (out_features, in_features)
    w2: (1, F)
    compute_dtype: optional jnp.bfloat16 to halve x/w1 HBM traffic
                   (f32 accumulation kept; ~1e-2 rel. error vs f32 inputs).
    returns: (B, 1) float32
    """
    B, in_dim = x.shape
    F_ = w1.shape[0]
    assert w1.shape == (F_, in_dim), f"w1 shape {w1.shape} != ({F_}, {in_dim})"
    assert w2.shape == (1, F_), f"w2 shape {w2.shape} != (1, {F_})"
    assert in_dim == 10 * F_, f"in_dim {in_dim} != 10 * feature_maps ({10 * F_})"

    if compute_dtype is not None:
        x = x.astype(compute_dtype)
    x_itemsize = x.dtype.itemsize

    # Pre-transpose w1 once (tiny HBM-side op) so the kernel matmul is NN.
    w1_t = jnp.transpose(w1)  # (in_dim, F)
    if compute_dtype is not None:
        w1_t = w1_t.astype(compute_dtype)
    w2 = w2.astype(jnp.float32)

    # --- Generation-aware VMEM budget & batch-tile selection ----------------
    vmem_cap = _vmem_capacity_bytes()          # 64 MiB (v7x) .. 128 MiB (v5e/v6e)
    vmem_budget = int(vmem_cap * 0.6)          # headroom for compiler scratch
    w_bytes = w1_t.size * w1_t.dtype.itemsize + w2.size * w2.dtype.itemsize
    x_budget = max(vmem_budget - w_bytes - (1 << 20), 2 * 8 * in_dim * x_itemsize)
    tb_vmem_cap = _round_down_8(x_budget // (2 * in_dim * x_itemsize))

    if B <= 32:
        # Too small to split usefully: one full-batch tile.
        TB = B
    else:
        # At least ~4 grid steps so ("parallel",) can feed both v7x
        # TensorCores, capped by the target tile and the VMEM budget.
        TB = min(int(batch_tile), tb_vmem_cap, _round_up_8(pl.cdiv(B, 4)))
        TB = max(TB, 8)

    grid = (pl.cdiv(B, TB),)

    return pl.pallas_call(
        _disc_kernel,
        out_shape=jax.ShapeDtypeStruct((B, 1), jnp.float32),
        grid_spec=pltpu.PrefetchScalarGridSpec(
            num_scalar_prefetch=0,
            grid=grid,
            in_specs=[
                # x: tiled over the batch, double-buffered by default.
                pl.BlockSpec((TB, in_dim), lambda i: (i, 0)),
                # Weights: resident across all grid steps, single-buffered.
                pl.BlockSpec((in_dim, F_), lambda i: (0, 0),
                             pipeline_mode=pl.Buffered(1)),
                pl.BlockSpec((1, F_), lambda i: (0, 0),
                             pipeline_mode=pl.Buffered(1)),
            ],
            out_specs=pl.BlockSpec((TB, 1), lambda i: (i, 0)),
        ),
        compiler_params=pltpu.CompilerParams(
            # Batch tiles are independent -> shard across TCs on v7x.
            dimension_semantics=("parallel",),
            vmem_limit_bytes=vmem_budget,
        ),
    )(x, w1_t, w2)


def _reference(x, w1, w2):
    h = x @ w1.T
    h = jnp.where(h > 0, h, 0.1 * h)
    return h @ w2.T


if __name__ == "__main__":
    key = jax.random.PRNGKey(0)
    feature_maps = 32
    in_dim = 10 * feature_maps

    k_x, k_w1, k_w2 = jax.random.split(key, 3)

    # Deterministic PyTorch-style uniform init (no checkpoint needed).
    bound1 = 1.0 / in_dim ** 0.5
    bound2 = 1.0 / feature_maps ** 0.5
    w1 = jax.random.uniform(k_w1, (feature_maps, in_dim),
                            minval=-bound1, maxval=bound1, dtype=jnp.float32)
    w2 = jax.random.uniform(k_w2, (1, feature_maps),
                            minval=-bound2, maxval=bound2, dtype=jnp.float32)

    # Small-but-representative batch that is NOT a multiple of the tile size,
    # so the partial-last-tile path and multi-step grid are both exercised.
    # (Padded rows never mix into valid rows: each output row reads only its
    # own x row, and padded output rows are dropped on writeback.)
    B = 200
    x = jax.random.normal(k_x, (B, in_dim), dtype=jnp.float32)

    out = discriminator_single2(x, w1, w2, batch_tile=64)
    out = jax.block_until_ready(out)

    ref = _reference(x, w1, w2)
    assert out.shape == (B, 1)
    assert jnp.allclose(out, ref, atol=1e-5, rtol=1e-5), (
        f"max err {float(jnp.max(jnp.abs(out - ref)))}")

    print("KERNEL_OK")
</pallas_src>

<mosaic_0001>
module attributes {stable_mosaic.version = 11 : i64} {
  func.func @_disc_kernel(%arg0: i32, %arg1: memref<56x320xf32, #tpu.memory_space<vmem>>, %arg2: memref<320x32xf32, #tpu.memory_space<vmem>>, %arg3: memref<1x32xf32, #tpu.memory_space<vmem>>, %arg4: memref<56x1xf32, #tpu.memory_space<vmem>>) attributes {dimension_semantics = [#tpu.dimension_semantics<parallel>], iteration_bounds = array<i64: 4>, scalar_prefetch = 0 : i64, scratch_operands = 0 : i64, tpu.core_type = #tpu.core_type<tc>, window_params = [{transform_indices = @transform_0, window_bounds = array<i64: 56, 320>}, {pipeline_mode = #tpu.pipeline_mode<synchronous>, transform_indices = @transform_1, window_bounds = array<i64: 320, 32>}, {pipeline_mode = #tpu.pipeline_mode<synchronous>, transform_indices = @transform_2, window_bounds = array<i64: 1, 32>}, {transform_indices = @transform_3, window_bounds = array<i64: 56, 1>}]} {
    %c0 = arith.constant 0 : index
    %c0_0 = arith.constant 0 : index
    %0 = vector.load %arg1[%c0, %c0_0] : memref<56x320xf32, #tpu.memory_space<vmem>>, vector<56x320xf32>
    %c0_1 = arith.constant 0 : index
    %c0_2 = arith.constant 0 : index
    %1 = vector.load %arg2[%c0_1, %c0_2] : memref<320x32xf32, #tpu.memory_space<vmem>>, vector<320x32xf32>
    %cst = arith.constant dense<0.000000e+00> : vector<56x32xf32>
    %2 = tpu.matmul %0, %1, %cst {dimension_numbers = #tpu.dot_dimension_numbers<[1], [0], [0], [1], [0, 0, 1, 1], [], []>} : vector<56x320xf32>, vector<320x32xf32>, vector<56x32xf32> -> vector<56x32xf32>
    %cst_3 = arith.constant 0.000000e+00 : f32
    %3 = vector.broadcast %cst_3 : f32 to vector<56x32xf32>
    %4 = arith.cmpf ogt, %2, %3 : vector<56x32xf32>
    %cst_4 = arith.constant 1.000000e-01 : f32
    %5 = vector.broadcast %cst_4 : f32 to vector<56x32xf32>
    %6 = arith.mulf %5, %2 : vector<56x32xf32>
    %7 = arith.select %4, %2, %6 : vector<56x32xi1>, vector<56x32xf32>
    %c0_5 = arith.constant 0 : index
    %c0_6 = arith.constant 0 : index
    %8 = vector.load %arg3[%c0_5, %c0_6] : memref<1x32xf32, #tpu.memory_space<vmem>>, vector<1x32xf32>
    %9 = vector.broadcast %8 : vector<1x32xf32> to vector<56x32xf32>
    %10 = arith.mulf %7, %9 : vector<56x32xf32>
    %cst_7 = arith.constant dense<0.000000e+00> : vector<56xf32>
    %11 = vector.multi_reduction <add>, %10, %cst_7 [1] : vector<56x32xf32> to vector<56xf32>
    %12 = vector.shape_cast %11 : vector<56xf32> to vector<56x1xf32>
    %c0_8 = arith.constant 0 : index
    %c0_9 = arith.constant 0 : index
    %13 = vector.load %arg4[%c0_8, %c0_9] : memref<56x1xf32, #tpu.memory_space<vmem>>, vector<56x1xf32>
    tpu.vector_store %arg4[%c0_8, %c0_9], %12 {strides = array<i32>} : memref<56x1xf32, #tpu.memory_space<vmem>>, vector<56x1xf32>,
    return
  }
  func.func @transform_0(%arg0: i32) -> (i32, i32) {
    %c0_i32 = arith.constant 0 : i32
    %c0_i32_0 = arith.constant 0 : i32
    return %arg0, %c0_i32 : i32, i32
  }
  func.func @transform_1(%arg0: i32) -> (i32, i32) {
    %c0_i32 = arith.constant 0 : i32
    %c0_i32_0 = arith.constant 0 : i32
    %c0_i32_1 = arith.constant 0 : i32
    return %c0_i32, %c0_i32_0 : i32, i32
  }
  func.func @transform_2(%arg0: i32) -> (i32, i32) {
    %c0_i32 = arith.constant 0 : i32
    %c0_i32_0 = arith.constant 0 : i32
    %c0_i32_1 = arith.constant 0 : i32
    return %c0_i32, %c0_i32_0 : i32, i32
  }
  func.func @transform_3(%arg0: i32) -> (i32, i32) {
    %c0_i32 = arith.constant 0 : i32
    %c0_i32_0 = arith.constant 0 : i32
    return %arg0, %c0_i32 : i32, i32
  }
}

</mosaic_0001>

<bundles_post_ra>
// kernel: tpu_custom_call.1
= control target key start
LH: loop header
LB: loop body
LE: loop exit
PB: predicated region body
PF: predicated region fallthrough
CT: control target
= control target key end

     0   :  { %8 = vsyncpa [#allocation3], 0  ;;  %s1438_s0 = inlined_call_operand.hbm [shape: f32[200,320], index: 0, kind: input, shape index: {}]   ;;  %s1439_s1 = inlined_call_operand.vmem [shape: f32[320,32], index: 1, kind: input, shape index: {}]   ;;  %s1440_s2 = inlined_call_operand.vmem [shape: f32[1,32], index: 2, kind: input, shape index: {}]   ;;  %s1441_s3 = inlined_call_operand.vmem [shape: f32[200,1], index: 3, kind: output, shape index: {}]  }
   0x1   :  { %10 = vsyncpa [#allocation3 + $0x1], 0  ;;  %s1054_s12 = smov 0   ;;  %s1056_s13 = smov 0  }
   0x2   :  { %s1058_s14 = smov 0   ;;  %s1060_s15 = smov 0  }
   0x3 LB: > { %s1073_s16 = sadd.s32 4294967295, %s997_s15   ;;  %s1076_s17 = sadd.s32 1, %s997_s15   ;;  %s997_s15 = sphi %s1060_s15, %s1451_s15   ;;  %s993_s14 = sphi %s1058_s14, %s1450_s14   ;;  %s989_s13 = sphi %s1056_s13, %s1449_s13   ;;  %s985_s12 = sphi %s1054_s12, %s1448_s12  }
   0x4   : > { %s20_s18 = ssub.s32 %s997_s15, %s1076_s17  ;;  %s23_s19 = sadd.s32 1, %s993_s14 }
   0x5   : > { %p21_p0 = scmp.eq.s32.totalorder %s20_s18, 0  ;;  %p30_p1 = scmp.ne.s32.totalorder %s993_s14, %s989_s13 }
   0x6   : > { %p31_p2 = scmp.eq.s32.totalorder %s997_s15, 0  ;;  %p36_p3 = scmp.ne.s32.totalorder %s989_s13, %s985_s12 }
   0x7   : > { %s1086_s20 = scalar_select %p21_p0, %s993_s14, %s23_s19  }
   0x8   : > { %p32_p4 = por %p31_p2, %p30_p1  ;;  %p37_p5 = scmp.eq.s32.totalorder %s1073_s16, 0 }
   0x9   : > { %p102_p6 = scmp.eq.s32.totalorder %s1073_s16, 3  ;;  %p721_p9 = scmp.ge.s32.totalorder %s997_s15, 4 }
   0xa   : > { %p1090_p7 = por %p37_p5, %p36_p3 }
   0xb   : > { %p1094_p8 = por %p102_p6, %p30_p1  ;;  %130 = sbr.rel (%p721_p9) target bundleno = 58 (0x3a), region = 24 }
  0x10   : > { %133 = sbr.rel (!%p32_p4) target bundleno = 58 (0x3a), region = 28  ;;  %s134_s23 = sand.u32 (%p32_p4), 1, %s993_s14  }
  0x11   : > { %s139_s24 = smul.u32 (%p32_p4), 7, %s997_s15  ;;  %s1101_s30 = scalar_lea.sflag (%p32_p4), [#allocation3], %s134_s23 }
  0x12   : > { %s780_s25 = smul.u32 (%p32_p4), 168, %s134_s23 }
  0x13   : > { %s140_s26 = ssub.s32 (%p32_p4), 25, %s139_s24 }
  0x14   : > { %p141_p10 = scmp.lt.s32.totalorder (%p32_p4), %s140_s26, 7  ;;  %s138_s4 = scalar_lea.vmem (%p32_p4), [#allocation2], %s780_s25 }
  0x16   : > { %s1453_s26 = smov (!%p141_p10, %s140_s26), 7 }
  0x17   : > { %s723_s27 = smul.u32 24, %s1453_s26 }
  0x19   : > { %s145_s28 = ssub.s32 168, %s723_s27 }
  0x1a   : > { %s146_s29 = sshll.u32 %s145_s28, 4 }
  0x1b   : > { %147 = vsyncadd %s1101_s30, %s146_s29  ;;  %p1104_p11 = scmp.ne.s32.totalorder %s723_s27, 0  ;;  %s785_s6 = smul.u32 168, %s997_s15 }
  0x1c   : > { %s1109_s7 = sshll.u32 %s138_s4, 4  ;;  %s1111_s8 = smul.u32 384, %s1453_s26  ;;  %s156_s7 = int_to_ptr.vmem [resolvable:$true] %s1109_s7 }
  0x1d   : > { %s151_s11 = scalar_lea.hbm %s1438_s0, %s785_s6  ;;  %s903_s28 = scalar_lea.hbm %s1438_s0, 600 }
  0x1e   : > { %s153_s12 = sshll.u32 %s151_s11, 4  ;;  %s894_s19 = sshrl.u32 %s1111_s8, 4  ;;  %s1117_s12 = int_to_ptr.hbm [resolvable:$true] %s153_s12 }
  0x1f   : > { %s892_s18 = sshra.s32 %s1117_s12, 4  ;;  %s930_s23 = sshll.u32 %s894_s19, 4  ;;  %s893_s18 = int_to_ptr.hbm [resolvable:$true] %s892_s18 }
  0x20   : > { %p896_p12 = scmp.ne.s32.totalorder %s930_s23, %s1111_s8  ;;  %s897_s24 = sadd.s32 1, %s894_s19 }
  0x21   : > { %p904_p2 = scmp.lt.s32.totalorder %s893_s18, %s1438_s0 }
  0x22   : > { %s1455_s24 = smov (!%p896_p12, %s897_s24), %s894_s19 }
  0x23   : > { %s899_s25 = scalar_lea.hbm %s893_s18, %s1455_s24 }
  0x24   : > { %p900_p13 = scmp.ne.s32.totalorder %s893_s18, %s899_s25  ;;  %p905_p3 = scmp.lt.s32.totalorder %s903_s28, %s899_s25 }
  0x26   : > { %p901_p0 = pnand %p900_p13, %p1104_p11  ;;  %p906_p4 = por %p905_p3, %p904_p2 }
  0x28   : > { %p902_p1 = pneg %p901_p0 }
  0x2a   : > { %p907_p5 = pnand %p906_p4, %p902_p1 }
  0x2c   : > { %910 = shalt.err (!%p907_p5)
}
  0x2d   : > { %s911_s6 = sshra.s32 %s156_s7, 4  ;;  %s1031_s10 = smov [#allocation2]   ;;  %s912_s6 = int_to_ptr.vmem [resolvable:$true] %s911_s6 }
  0x2e   : > { %s918_s9 = scalar_lea.vmem %s912_s6, %s1455_s24  ;;  %s922_s11 = scalar_lea.vmem %s1031_s10, 336 }
  0x2f   : > { %p919_p6 = scmp.ne.s32.totalorder %s912_s6, %s918_s9  ;;  %p924_p12 = scmp.lt.s32.totalorder %s922_s11, %s918_s9 }
  0x31   : > { %p920_p9 = pnand %p919_p6, %p1104_p11 }
  0x33   : > { %p921_p10 = pneg %p920_p9 }
  0x35   : > { %p926_p13 = pnand %p924_p12, %p921_p10 }
  0x37   : > { %929 = shalt.err (!%p926_p13)
}
  0x38   : > { %s1032_s18 = smov 384   ;;  %s1033_s19 = smov 24  }
  0x39   : > { %161 = dma.hbm_to_vmem [thread:$0]  (%p1104_p11), %s1117_s12, %s1111_s8, %s156_s7, %s1101_s30, %s1032_s18, %s1032_s18, %s1033_s19  }
  0x3a PF: > { %p727_p0 = scmp.ge.s32.totalorder %s997_s15, 1  ;;  %p163_p1 = scmp.lt.s32.totalorder %s997_s15, 5 }
  0x3c   : > { %p164_p2 = pnand %p727_p0, %p163_p1 }
  0x3d   : > { %s1144_s23 = sand.u32 (!%p164_p2), 1, %s989_s13  }
  0x3e   : > { %167 = sbr.rel (%p164_p2) target bundleno = 449 (0x1c1), region = 32  ;;  %s170_s25 = scalar_lea.sflag (!%p164_p2), [#allocation3], %s1144_s23 }
  0x3f   : > { %s782_s24 = smul.u32 (!%p164_p2), 168, %s1144_s23 }
  0x41   : > { %s1148_s26 = scalar_lea.vmem (!%p164_p2), [#allocation2], %s782_s24 }
  0x43   : > { %980 = dma.done.wait (%p1090_p7), %s170_s25, 2688  }
  0x44   : > { %982 = vsyncadd (%p1090_p7), %s170_s25, 4294964608  ;;  %v243_v0 = vld [vmem:[%s1439_s1 + $0x78] sm:$0xff]  ;;  %v242_v3 = vld [vmem:[%s1439_s1 + $0x70] sm:$0xff]  ;;  %vm268_vm0 = vcmask 523264   ;;  %vm436_vm2 = vcmask 261120   ;;  %vm458_vm9 = vcmask 7168  }
  0x45   : > { %v1160_v1 = vld [vmem:[%s1439_s1 + $0xf8] sm:$0xff]  ;;  %290 = vmatpush.msra.mxu0 %v243_v0  ;;  %748 = vmatpush.msra.mxu3 %v243_v0  ;;  %v1171_v4 = vld [vmem:[%s1439_s1 + $0xf0] sm:$0xff]  ;;  %v241_v6 = vld [vmem:[%s1439_s1 + $0x68] sm:$0xff]  ;;  %s747_s28 = smul.u32 (%p1094_p8), 56, %s1073_s16 }
  0x46   : > { %v267_v2 = vld [vmem:[%s1439_s1 + $0x138] sm:$0xff]  ;;  %v266_v5 = vld [vmem:[%s1439_s1 + $0x130] sm:$0xff]  ;;  %328 = vmatpush.msra.mxu1 %v1160_v1  ;;  %v1183_v7 = vld [vmem:[%s1439_s1 + $0xe8] sm:$0xff] }
  0x47   : > { %374 = vmatpush.msra.mxu2 %v267_v2  ;;  %291 = vmatpush.msra.mxu0 %v242_v3  ;;  %v265_v8 = vld [vmem:[%s1439_s1 + $0x128] sm:$0xff]  ;;  %v240_v9 = vld [vmem:[%s1439_s1 + $0x60] sm:$0xff]  ;;  %v239_v12 = vld [vmem:[%s1439_s1 + $0x58] sm:$0xff]  ;;  %s1382_s6 = scalar_lea.vmem (%p1094_p8), %s1441_s3, %s747_s28  }
  0x48   : > { %749 = vmatpush.msra.mxu3 %v242_v3  ;;  %329 = vmatpush.msra.mxu1 %v1171_v4  ;;  %v1195_v10 = vld [vmem:[%s1439_s1 + $0xe0] sm:$0xff]  ;;  %v1207_v13 = vld [vmem:[%s1439_s1 + $0xd8] sm:$0xff]  ;;  %v238_v15 = vld [vmem:[%s1439_s1 + $0x50] sm:$0xff] }
  0x49   : > { %375 = vmatpush.msra.mxu2 %v266_v5  ;;  %292 = vmatpush.msra.mxu0 %v241_v6  ;;  %v264_v11 = vld [vmem:[%s1439_s1 + $0x120] sm:$0xff]  ;;  %v263_v14 = vld [vmem:[%s1439_s1 + $0x118] sm:$0xff]  ;;  %v1219_v16 = vld [vmem:[%s1439_s1 + $0xd0] sm:$0xff] }
  0x4a   : > { %750 = vmatpush.msra.mxu3 %v241_v6  ;;  %330 = vmatpush.msra.mxu1 %v1183_v7  ;;  %v262_v17 = vld [vmem:[%s1439_s1 + $0x110] sm:$0xff]  ;;  %v237_v18 = vld [vmem:[%s1439_s1 + $0x48] sm:$0xff]  ;;  %v236_v21 = vld [vmem:[%s1439_s1 + $0x40] sm:$0xff] }
  0x4b   : > { %376 = vmatpush.msra.mxu2 %v265_v8  ;;  %293 = vmatpush.msra.mxu0 %v240_v9  ;;  %v1231_v19 = vld [vmem:[%s1439_s1 + $0xc8] sm:$0xff]  ;;  %v1243_v22 = vld [vmem:[%s1439_s1 + $0xc0] sm:$0xff]  ;;  %v235_v24 = vld [vmem:[%s1439_s1 + $0x38] sm:$0xff] }
  0x4c   : > { %751 = vmatpush.msra.mxu3 %v240_v9  ;;  %331 = vmatpush.msra.mxu1 %v1195_v10  ;;  %v261_v20 = vld [vmem:[%s1439_s1 + $0x108] sm:$0xff]  ;;  %v260_v23 = vld [vmem:[%s1439_s1 + $0x100] sm:$0xff]  ;;  %v1255_v25 = vld [vmem:[%s1439_s1 + $0xb8] sm:$0xff] }
  0x4d   : > { %377 = vmatpush.msra.mxu2 %v264_v11  ;;  %294 = vmatpush.msra.mxu0 %v239_v12  ;;  %v209_v26 = vld [vmem:[%s1148_s26 + $0x10] sm:$0xff]  ;;  %v233_v29 = vld [vmem:[%s1439_s1 + $0x28] sm:$0xff]  ;;  %v232_v31 = vld [vmem:[%s1439_s1 + $0x20] sm:$0xff] }
  0x4e   : > { %752 = vmatpush.msra.mxu3 %v239_v12  ;;  %332 = vmatpush.msra.mxu1 %v1207_v13  ;;  %v234_v27 = vld [vmem:[%s1439_s1 + $0x30] sm:$0xff]  ;;  %v1275_v30 = vld [vmem:[%s1439_s1 + $0xa8] sm:$0xff]  ;;  %v248_v32 = vld [vmem:[%s1439_s1 + $0xa0] sm:$0xff] }
  0x4f   : > { %378 = vmatpush.msra.mxu2 %v263_v14  ;;  %295 = vmatpush.msra.mxu0 %v238_v15  ;;  %v1265_v28 = vld [vmem:[%s1439_s1 + $0xb0] sm:$0xff]  ;;  %v231_v33 = vld [vmem:[%s1439_s1 + $0x18] sm:$0xff]  ;;  %v229_v38 = vld [vmem:[%s1439_s1 + $0x8] sm:$0xff] }
  0x50   : > { %753 = vmatpush.msra.mxu3 %v238_v15  ;;  %333 = vmatpush.msra.mxu1 %v1219_v16  ;;  %v247_v34 = vld [vmem:[%s1439_s1 + $0x98] sm:$0xff]  ;;  %v212_v35 = vld [vmem:[%s1148_s26 + $0x28] sm:$0xff]  ;;  %v228_v40 = vld [vmem:[%s1439_s1] sm:$0xff] }
  0x51   : > { %379 = vmatpush.msra.mxu2 %v262_v17  ;;  %296 = vmatpush.msra.mxu0 %v237_v18  ;;  %v230_v36 = vld [vmem:[%s1439_s1 + $0x10] sm:$0xff]  ;;  %v245_v39 = vld [vmem:[%s1439_s1 + $0x88] sm:$0xff]  ;;  %v244_v41 = vld [vmem:[%s1439_s1 + $0x80] sm:$0xff] }
  0x52   : > { %754 = vmatpush.msra.mxu3 %v237_v18  ;;  %334 = vmatpush.msra.mxu1 %v1231_v19  ;;  %v246_v37 = vld [vmem:[%s1439_s1 + $0x90] sm:$0xff]  ;;  %v207_v42 = vld [vmem:[%s1148_s26] sm:$0xff]  ;;  %v222_v45 = vld [vmem:[%s1148_s26 + $0x78] sm:$0xff] }
  0x53   : > { %380 = vmatpush.msra.mxu2 %v261_v20  ;;  %297 = vmatpush.msra.mxu0 %v236_v21  ;;  %v208_v43 = vld [vmem:[%s1148_s26 + $0x8] sm:$0xff]  ;;  %v215_v44 = vld [vmem:[%s1148_s26 + $0x40] sm:$0xff]  ;;  %v210_v46 = vld [vmem:[%s1148_s26 + $0x18] sm:$0xff] }
  0x54   : > { %755 = vmatpush.msra.mxu3 %v236_v21  ;;  %335 = vmatpush.msra.mxu1 %v1243_v22  ;;  %v211_v47 = vld [vmem:[%s1148_s26 + $0x20] sm:$0xff]  ;;  %v218_v48 = vld [vmem:[%s1148_s26 + $0x58] sm:$0xff]  ;;  %v225_v49 = vld [vmem:[%s1148_s26 + $0x90] sm:$0xff] }
  0x55   : > { %381 = vmatpush.msra.mxu2 %v260_v23  ;;  %298 = vmatpush.msra.mxu0 %v235_v24  ;;  %v213_v50 = vld [vmem:[%s1148_s26 + $0x30] sm:$0xff]  ;;  %v214_v51 = vld [vmem:[%s1148_s26 + $0x38] sm:$0xff]  ;;  %v216_v53 = vld [vmem:[%s1148_s26 + $0x48] sm:$0xff] }
  0x56   : > { %756 = vmatpush.msra.mxu3 %v235_v24  ;;  %336 = vmatpush.msra.mxu1 %v1255_v25  ;;  %v221_v52 = vld [vmem:[%s1148_s26 + $0x70] sm:$0xff]  ;;  %v224_v55 = vld [vmem:[%s1148_s26 + $0x88] sm:$0xff]  ;;  %v226_v56 = vld [vmem:[%s1148_s26 + $0x98] sm:$0xff] }
  0x57   : > { %728 = vmatmul.msk.f32.vlgmr.msra.gmra.mxu2 %vm268_vm0, %v209_v26  ;;  %299 = vmatpush.msra.mxu0 %v234_v27  ;;  %v217_v54 = vld [vmem:[%s1148_s26 + $0x50] sm:$0xff]  ;;  %v219_v57 = vld [vmem:[%s1148_s26 + $0x60] sm:$0xff]  ;;  %v220_v58 = vld [vmem:[%s1148_s26 + $0x68] sm:$0xff] }
  0x58   : > { %757 = vmatpush.msra.mxu3 %v234_v27  ;;  %337 = vmatpush.msra.mxu1 %v1265_v28  ;;  %v227_v59 = vld [vmem:[%s1148_s26 + $0xa0] sm:$0xff] }
  0x59   : > { %300 = vmatpush.msra.mxu0 %v233_v29  ;;  %v223_v60 = vld [vmem:[%s1148_s26 + $0x80] sm:$0xff]  ;;  %s783_s26 = smul.u32 56, %s1144_s23 }
  0x5a   : > { %758 = vmatpush.msra.mxu3 %v233_v29  ;;  %338 = vmatpush.msra.mxu1 %v1275_v30  ;;  %v1349_v3 = vld [vmem:[%s1440_s2] ss:$0 sm:$0xff]  ;;  %s473_s23 = smul.u32 (%p1094_p8), 7, %s1073_s16 }
  0x5b   : > { %301 = vmatpush.msra.mxu0 %v232_v31  ;;  %s1366_s27 = scalar_lea.vmem [#allocation4], %s783_s26  }
  0x5c   : > { %759 = vmatpush.msra.mxu3 %v232_v31  ;;  %339 = vmatpush.msra.mxu1 %v248_v32  ;;  %s474_s21 = ssub.s32 (%p1094_p8), 25, %s473_s23 }
  0x5d   : > { %302 = vmatpush.msra.mxu0 %v231_v33  ;;  %p475_p7 = scmp.lt.s32.totalorder (%p1094_p8), %s474_s21, 7 }
  0x5e   : > { %760 = vmatpush.msra.mxu3 %v231_v33  ;;  %340 = vmatpush.msra.mxu1 %v247_v34 }
  0x5f   : > { %729 = vmatmul.msk.f32.gmra.mxu2 %vm268_vm0, %v212_v35  ;;  %303 = vmatpush.msra.mxu0 %v230_v36 }
  0x60   : > { %761 = vmatpush.msra.mxu3 %v230_v36  ;;  %341 = vmatpush.msra.mxu1 %v246_v37 }
  0x61   : > { %304 = vmatpush.msra.mxu0 %v229_v38 }
  0x62   : > { %762 = vmatpush.msra.mxu3 %v229_v38  ;;  %342 = vmatpush.msra.mxu1 %v245_v39 }
  0x63   : > { %305 = vmatpush.msra.mxu0 %v228_v40 }
  0x64   : > { %763 = vmatpush.msra.mxu3 %v228_v40  ;;  %343 = vmatpush.msra.mxu1 %v244_v41 }
  0x65   : > { %306 = vmatmul.f32.vlgmr.msra.gmra.mxu0 %v207_v42  ;;  %344 = vmatmul.f32.vlgmr.msra.gmra.mxu1 %v208_v43 }
  0x66   : > { %764 = vmatpush.msrb.mxu3 %v1160_v1 }
  0x67   : > { %730 = vmatmul.msk.f32.gmra.mxu2 %vm268_vm0, %v215_v44  ;;  %321 = vmatmul.f32.vlgmr.msra.gmra.mxu3 %v222_v45 }
  0x68   : > { %765 = vmatpush.msrb.mxu3 %v1171_v4 }
  0x6a   : > { %766 = vmatpush.msrb.mxu3 %v1183_v7 }
  0x6c   : > { %767 = vmatpush.msrb.mxu3 %v1195_v10 }
  0x6d   : > { %309 = vmatmul.f32.gmra.mxu0 %v210_v46  ;;  %347 = vmatmul.f32.gmra.mxu1 %v211_v47 }
  0x6e   : > { %768 = vmatpush.msrb.mxu3 %v1207_v13 }
  0x6f   : > { %731 = vmatmul.msk.f32.gmra.mxu2 %vm268_vm0, %v218_v48  ;;  %324 = vmatmul.f32.gmra.mxu3 %v225_v49 }
  0x70   : > { %769 = vmatpush.msrb.mxu3 %v1219_v16 }
  0x72   : > { %770 = vmatpush.msrb.mxu3 %v1231_v19 }
  0x74   : > { %771 = vmatpush.msrb.mxu3 %v1243_v22 }
  0x75   : > { %312 = vmatmul.f32.gmra.mxu0 %v213_v50  ;;  %350 = vmatmul.f32.gmra.mxu1 %v214_v51 }
  0x76   : > { %772 = vmatpush.msrb.mxu3 %v1255_v25 }
  0x77   : > { %732 = vmatmul.msk.f32.gmra.mxu2 %vm268_vm0, %v221_v52 }
  0x78   : > { %773 = vmatpush.msrb.mxu3 %v1265_v28 }
  0x7a   : > { %774 = vmatpush.msrb.mxu3 %v1275_v30 }
  0x7c   : > { %775 = vmatpush.msrb.mxu3 %v248_v32 }
  0x7d   : > { %315 = vmatmul.f32.gmra.mxu0 %v216_v53  ;;  %353 = vmatmul.f32.gmra.mxu1 %v217_v54 }
  0x7e   : > { %776 = vmatpush.msrb.mxu3 %v247_v34 }
  0x7f   : > { %733 = vmatmul.msk.f32.gmra.mxu2 %vm268_vm0, %v224_v55 }
  0x80   : > { %777 = vmatpush.msrb.mxu3 %v246_v37 }
  0x82   : > { %778 = vmatpush.msrb.mxu3 %v245_v39 }
  0x84   : > { %779 = vmatpush.msrb.mxu3 %v244_v41 }
  0x85   : > { %362 = vmatmul.f32.vlgmr.msrb.gmra.mxu3 %v226_v56  ;;  %318 = vmatmul.f32.gmra.mxu0 %v219_v57 }
  0x86   : > { %356 = vmatmul.f32.gmra.mxu1 %v220_v58 }
  0x87   : > { %734 = vmatmul.msk.f32.gmra.mxu2 %vm268_vm0, %v227_v59 }
  0x8e   : > { %359 = vmatmul.f32.gmra.mxu1 %v223_v60 }
  0xda   : > { %v383_v61 = vpop.f32.mrf.mxu2 }
  0xe2   : > { %v386_v62 = vpop.f32.mrf.mxu2  ;;  %v307_v63 = vpop.f32.mrf.mxu0 }
  0xe3   : > { %v345_v0 = vpop.f32.mrf.mxu1 }
  0xe4   : > { %v346_v1 = vadd.f32 %v345_v0, %v307_v63 }
  0xe6   : > { %v384_v2 = vadd.f32 %v383_v61, %v346_v1 }
  0xe8   : > { %v411_v4 = vmul.f32 0.1, %v384_v2  ;;  %vm404_vm1 = vcmp.gt.f32.partialorder %v384_v2, 0.0 }
  0xea   : > { %v389_v5 = vpop.f32.mrf.mxu2  ;;  %v310_v6 = vpop.f32.mrf.mxu0  ;;  %v418_v7 = vsel %vm404_vm1, %v384_v2, %v411_v4 }
  0xeb   : > { %v348_v8 = vpop.f32.mrf.mxu1  ;;  %v429_v9 = vmul.f32 %v1349_v3, %v418_v7  ;;  %v322_v20 = vpop.f32.mrf.mxu3 }
  0xec   : > { %v349_v10 = vadd.f32 %v348_v8, %v310_v6 }
  0xed   : > { %v437_v11 = vsel %vm436_vm2, %v429_v9, 0.0 }
  0xee   : > { %v387_v12 = vadd.f32 %v386_v62, %v349_v10  ;;  %438 = vadd.xlane.f32.xlu0 %v437_v11 }
  0xf0   : > { %v412_v13 = vmul.f32 0.1, %v387_v12  ;;  %vm405_vm3 = vcmp.gt.f32.partialorder %v387_v12, 0.0 }
  0xf2   : > { %v392_v14 = vpop.f32.mrf.mxu2  ;;  %v313_v15 = vpop.f32.mrf.mxu0  ;;  %v419_v16 = vsel %vm405_vm3, %v387_v12, %v412_v13 }
  0xf3   : > { %v351_v17 = vpop.f32.mrf.mxu1  ;;  %v430_v18 = vmul.f32 %v1349_v3, %v419_v16  ;;  %v325_v32 = vpop.f32.mrf.mxu3 }
  0xf4   : > { %v352_v19 = vadd.f32 %v351_v17, %v313_v15 }
  0xf5   : > { %v440_v21 = vsel %vm436_vm2, %v430_v18, 0.0 }
  0xf6   : > { %v390_v22 = vadd.f32 %v389_v5, %v352_v19  ;;  %441 = vadd.xlane.f32.xlu0 %v440_v21 }
  0xf8   : > { %v413_v23 = vmul.f32 0.1, %v390_v22  ;;  %vm406_vm4 = vcmp.gt.f32.partialorder %v390_v22, 0.0 }
  0xfa   : > { %v395_v24 = vpop.f32.mrf.mxu2  ;;  %v316_v25 = vpop.f32.mrf.mxu0  ;;  %v420_v26 = vsel %vm406_vm4, %v390_v22, %v413_v23 }
  0xfb   : > { %v354_v27 = vpop.f32.mrf.mxu1  ;;  %v431_v28 = vmul.f32 %v1349_v3, %v420_v26 }
  0xfc   : > { %v355_v29 = vadd.f32 %v354_v27, %v316_v25 }
  0xfd   : > { %v443_v30 = vsel %vm436_vm2, %v431_v28, 0.0 }
  0xfe   : > { %v393_v31 = vadd.f32 %v392_v14, %v355_v29  ;;  %444 = vadd.xlane.f32.xlu1 %v443_v30 }
 0x100   : > { %v414_v33 = vmul.f32 0.1, %v393_v31  ;;  %vm407_vm5 = vcmp.gt.f32.partialorder %v393_v31, 0.0 }
 0x102   : > { %v398_v34 = vpop.f32.mrf.mxu2  ;;  %v319_v35 = vpop.f32.mrf.mxu0  ;;  %v421_v36 = vsel %vm407_vm5, %v393_v31, %v414_v33 }
 0x103   : > { %v357_v37 = vpop.f32.mrf.mxu1  ;;  %v432_v38 = vmul.f32 %v1349_v3, %v421_v36 }
 0x104   : > { %v358_v39 = vadd.f32 %v357_v37, %v319_v35 }
 0x105   : > { %v446_v40 = vsel %vm436_vm2, %v432_v38, 0.0 }
 0x106   : > { %v396_v41 = vadd.f32 %v395_v24, %v358_v39  ;;  %447 = vadd.xlane.f32.xlu1 %v446_v40 }
 0x108   : > { %v415_v42 = vmul.f32 0.1, %v396_v41  ;;  %v363_v43 = vpop.f32.mrf.mxu3  ;;  %vm408_vm6 = vcmp.gt.f32.partialorder %v396_v41, 0.0 }
 0x109   : > { %v364_v44 = vadd.f32 %v363_v43, %v325_v32 }
 0x10a   : > { %v401_v45 = vpop.f32.mrf.mxu2  ;;  %v422_v46 = vsel %vm408_vm6, %v396_v41, %v415_v42 }
 0x10b   : > { %v402_v47 = vadd.f32 %v401_v45, %v364_v44  ;;  %v360_v48 = vpop.f32.mrf.mxu1  ;;  %v433_v49 = vmul.f32 %v1349_v3, %v422_v46 }
 0x10c   : > { %v361_v50 = vadd.f32 %v360_v48, %v322_v20 }
 0x10d   : > { %vm410_vm7 = vcmp.gt.f32.partialorder %v402_v47, 0.0  ;;  %v417_v51 = vmul.f32 0.1, %v402_v47  ;;  %v449_v52 = vsel %vm436_vm2, %v433_v49, 0.0 }
 0x10e   : > { %v399_v53 = vadd.f32 %v398_v34, %v361_v50  ;;  %450 = vadd.xlane.f32.xlu2 %v449_v52 }
 0x10f   : > { %v424_v54 = vsel %vm410_vm7, %v402_v47, %v417_v51 }
 0x110   : > { %v416_v55 = vmul.f32 0.1, %v399_v53  ;;  %v435_v56 = vmul.f32 %v1349_v3, %v424_v54  ;;  %vm409_vm8 = vcmp.gt.f32.partialorder %v399_v53, 0.0 }
 0x112   : > { %v455_v57 = vsel %vm436_vm2, %v435_v56, 0.0  ;;  %v423_v58 = vsel %vm409_vm8, %v399_v53, %v416_v55 }
 0x113   : > { %456 = vadd.xlane.f32.xlu0 %v455_v57  ;;  %v434_v59 = vmul.f32 %v1349_v3, %v423_v58 }
 0x115   : > { %v452_v60 = vsel %vm436_vm2, %v434_v59, 0.0 }
 0x116   : > { %453 = vadd.xlane.f32.xlu2 %v452_v60 }
 0x161   : > { %v439_v61 = vpop.xlane.xlu0 %438 }
 0x162   : > { %459 = vst.msk [vmem:[%s1366_s27] sm:$0xff] %vm458_vm9, %v439_v61 }
 0x169   : > { %v442_v62 = vpop.xlane.xlu0 %441 }
 0x16a   : > { %460 = vst.msk [vmem:[%s1366_s27 + $0x8] sm:$0xff] %vm458_vm9, %v442_v62 }
 0x171   : > { %v445_v63 = vpop.xlane.xlu1 %444 }
 0x172   : > { %461 = vst.msk [vmem:[%s1366_s27 + $0x10] sm:$0xff] %vm458_vm9, %v445_v63 }
 0x179   : > { %v448_v0 = vpop.xlane.xlu1 %447 }
 0x17a   : > { %462 = vst.msk [vmem:[%s1366_s27 + $0x18] sm:$0xff] %vm458_vm9, %v448_v0 }
 0x181   : > { %v451_v1 = vpop.xlane.xlu2 %450 }
 0x182   : > { %463 = vst.msk [vmem:[%s1366_s27 + $0x20] sm:$0xff] %vm458_vm9, %v451_v1 }
 0x186   : > { %v457_v2 = vpop.xlane.xlu0 %456  ;;  %472 = sbr.rel (!%p1094_p8) target bundleno = 449 (0x1c1), region = 40 }
 0x187   : > { %465 = vst.msk [vmem:[%s1366_s27 + $0x30] sm:$0xff] %vm458_vm9, %v457_v2 }
 0x189   : > { %v454_v3 = vpop.xlane.xlu2 %453 }
 0x18a   : > { %464 = vst.msk [vmem:[%s1366_s27 + $0x28] sm:$0xff] %vm458_vm9, %v454_v3 }
 0x18b   : > { %s1457_s21 = smov (!%p475_p7, %s474_s21), 7 }
 0x18c   : > { %s735_s9 = sshll.u32 %s1457_s21, 3 }
 0x18d   : > { %p738_p11 = scmp.eq.s32.totalorder %s735_s9, 0 }
 0x18e   : > { %886 = sdivrem.u32 (!%p738_p11), %s1457_s21, 7 }
 0x18f   : > { %483 = sbr.rel (%p738_p11) target bundleno = 449 (0x1c1), region = 44 }
 0x197   : > { %s1388_s22 = spop.drf %886 }
 0x198   : > { %s888_s10 = spop.drf %886  ;;  %p739_p8 = scmp.le.s32.totalorder %s1388_s22, 0 }
 0x199   : > { %s1445_s16 = smov (!%p739_p8), %s1382_s6  ;;  %s1446_s11 = smov (!%p739_p8), %s1366_s27 }
 0x19a   : > { %672 = sbr.rel (%p739_p8) target bundleno = 423 (0x1a7), region = 126  ;;  %s1397_s18 = smov (!%p739_p8), 0  }
 0x19b   : > { %s1399_s19 = smov (!%p739_p8), 0  }
 0x19f LB: >> { %v560_v4 = vld [vmem:[%s1005_s11] sm:$0xff]  ;;  %v562_v5 = vld [vmem:[%s1005_s11 + $0x8] sm:$0xff]  ;;  %v564_v6 = vld [vmem:[%s1005_s11 + $0x10] sm:$0xff]  ;;  %s574_s24 = sadd.s32 1, %s1009_s18  ;;  %s554_s19 = sadd.s32 1, %s1013_s19   ;;  %s1013_s19 = sphi %s1399_s19, %s554_s19   ;;  %s1009_s18 = sphi %s1397_s18, %s1447_s18   ;;  %s1005_s11 = sphi %s1446_s11, %s579_s11   ;;  %s1001_s16 = sphi %s1445_s16, %s580_s16  }
 0x1a0   : >> { %561 = vst [vmem:[%s1001_s16] sm:$0xff] %v560_v4  ;;  %v566_v7 = vld [vmem:[%s1005_s11 + $0x18] sm:$0xff]  ;;  %p575_p3 = scmp.ge.s32.totalorder %s574_s24, %s1388_s22  ;;  %v568_v8 = vld [vmem:[%s1005_s11 + $0x20] sm:$0xff]  ;;  %v570_v9 = vld [vmem:[%s1005_s11 + $0x28] sm:$0xff]  ;;  %p553_p4 = scmp.ge.s32.totalorder %s554_s19, %s1388_s22 }
 0x1a1   : >> { %563 = vst [vmem:[%s1001_s16 + $0x8] sm:$0xff] %v562_v5  ;;  %v572_v10 = vld [vmem:[%s1005_s11 + $0x30] sm:$0xff] }
 0x1a2   : >> { %565 = vst [vmem:[%s1001_s16 + $0x10] sm:$0xff] %v564_v6  ;;  %s1459_s24 = smov (%p575_p3, %s574_s24), 0  ;;  %556 = sbr.rel (!%p553_p4) target bundleno = 415 (0x19f), region = 132 }
 0x1a3   : >> { %567 = vst [vmem:[%s1001_s16 + $0x18] sm:$0xff] %v566_v7  ;;  %s577_s25 = smul.u32 56, %s1459_s24  ;;  %s1447_s18 = smov %s1459_s24 }
 0x1a4   : >> { %569 = vst [vmem:[%s1001_s16 + $0x20] sm:$0xff] %v568_v8 }
 0x1a5   : >> { %571 = vst [vmem:[%s1001_s16 + $0x28] sm:$0xff] %v570_v9  ;;  %s579_s11 = scalar_lea.vmem %s1366_s27, %s577_s25 [#allocation4]  }
 0x1a6   : >> { %573 = vst [vmem:[%s1001_s16 + $0x30] sm:$0xff] %v572_v10  ;;  %s580_s16 = scalar_lea.vmem %s1382_s6, %s577_s25  }
 0x1a7 PF: > { %889 = sdivrem.u32 %s1457_s21, 7 }
 0x1a8   : > { %s740_s30 = smul.u32 56, %s1388_s22 }
 0x1aa   : > { %s1420_s5 = scalar_lea.vmem %s1366_s27, %s740_s30 [#allocation4]   ;;  %s587_s15 = scalar_lea.vmem %s1382_s6, %s740_s30  }
 0x1b0   : > { %s890_s7 = spop.drf %889 }
 0x1b1   : > { %s891_s8 = spop.drf %889 }
 0x1b2   : > { %p742_p5 = scmp.le.s32.totalorder %s891_s8, 0 }
 0x1b3   : > { %s1015_s12 = smov (!%p742_p5), %s587_s15   ;;  %s1019_s26 = smov (!%p742_p5), %s1420_s5  }
 0x1b4   : > { %686 = sbr.rel (%p742_p5) target bundleno = 449 (0x1c1), region = 137  ;;  %s1023_s23 = smov (!%p742_p5), 0  }
 0x1b5   : > { %s1027_s28 = smov (!%p742_p5), 0  }
 0x1b9 LB: >> { %v597_v11 = vld [vmem:[%s1021_s26] sm:$0xff]  ;;  %s599_s27 = sadd.s32 1, %s1025_s23  ;;  %s591_s28 = sadd.s32 1, %s1029_s28   ;;  %s1029_s28 = sphi %s1027_s28, %s591_s28   ;;  %s1025_s23 = sphi %s1023_s23, %s1024_s23   ;;  %s1021_s26 = sphi %s1019_s26, %s604_s26   ;;  %s1017_s12 = sphi %s1015_s12, %s605_s12  }
 0x1ba   : >> { %598 = vst [vmem:[%s1017_s12] sm:$0xff] %v597_v11  ;;  %p600_p6 = scmp.ge.s32.totalorder %s599_s27, %s891_s8  ;;  %p590_p9 = scmp.ge.s32.totalorder %s591_s28, %s891_s8 }
 0x1bc   : >> { %s1461_s27 = smov (%p600_p6, %s599_s27), 0  ;;  %593 = sbr.rel (!%p590_p9) target bundleno = 441 (0x1b9), region = 143 }
 0x1bd   : >> { %s743_s21 = sshll.u32 %s1461_s27, 3  ;;  %s1024_s23 = smov %s1461_s27  }
 0x1be   : >> { %s604_s26 = scalar_lea.vmem %s1420_s5, %s743_s21 [#allocation4]   ;;  %s605_s12 = scalar_lea.vmem %s587_s15, %s743_s21  }
 0x1c1 PF: > { %p13_p10 = scmp.ge.s32.totalorder %s1076_s17, 6   ;;  %s1448_s12 = smov %s989_s13 }
 0x1c2   : > { %s1449_s13 = smov %s993_s14  ;;  %s1450_s14 = smov %s1086_s20 }
 0x1c3   : > { %s1451_s15 = smov %s1076_s17  ;;  %15 = sbr.rel (!%p13_p10) target bundleno = 3 (0x3), region = 154 }
 0x1c8   :  { %621 = vsyncpa [#allocation3], 1 }
 0x1c9   :  { %623 = vsyncpa [#allocation3 + $0x1], 1 }

</bundles_post_ra>
